<compile_context>
chip_gen: v5e
topology: v5e:2x2
jax: 0.10.0
libtpu: 0.0.40
codegen_flags: <defaults>
</compile_context>

<pallas_src>
import jax
import jax.numpy as jnp
from jax import lax
from jax.experimental import pallas as pl
from jax.experimental.pallas import tpu as pltpu


def _round_up(x, m):
    return (x + m - 1) // m * m


def _pad2(a, rows, cols):
    pr, pc = rows - a.shape[0], cols - a.shape[1]
    if pr == 0 and pc == 0:
        return a
    return jnp.pad(a, ((0, pr), (0, pc)))


# --------------------------- LoRA linear (tiled) ---------------------------

def _lora_linear_kernel(x_ref, w_ref, b_ref, xa_ref, bt_ref, o_ref, acc_ref):
    """One (tm, tn) output tile of  y = x @ W.T + bias + xa @ B.T.

    x_ref : (tm, tk)    activations (bf16)
    w_ref : (tn, tk)    frozen weight tile, PyTorch (out, in) layout (bf16)
    b_ref : (1,  tn)    bias tile (f32)
    xa_ref: (tm, r_p)   precomputed x @ A.T (f32, K-independent)
    bt_ref: (tn, r_p)   LoRA B tile, (out, r) layout (f32)
    acc_ref: (tm, tn)   f32 accumulator scratch (persists across the K axis)
    """
    k = pl.program_id(2)
    dn = (((1,), (1,)), ((), ()))   # contract dim 1 of both == "x @ rhs.T"

    @pl.when(k == 0)
    def _init():
        acc_ref[...] = jnp.zeros_like(acc_ref)

    acc_ref[...] += lax.dot_general(x_ref[...], w_ref[...], dn,
                                    preferred_element_type=jnp.float32)

    @pl.when(k == pl.num_programs(2) - 1)
    def _finalize():
        # LoRA second matmul runs once per output tile, in f32 (exact).
        lora = lax.dot_general(xa_ref[...], bt_ref[...], dn,
                               preferred_element_type=jnp.float32)
        o_ref[...] = (acc_ref[...] + lora + b_ref[...]).astype(o_ref.dtype)


def _pick_tiles(m_pad, n_pad, k_pad):
    """Per-generation defaults (bf16 W stream), clamped to the padded problem.

    Clamping only triggers when a dim is a single block, so tn never becomes a
    ragged multi-block size.
    """
    try:
        kind = jax.devices()[0].device_kind.lower()
    except Exception:  # pragma: no cover
        kind = ""
    if "v7" in kind:
        # 64 MiB physical VMEM per TC: ~2 MiB double-buffered bf16 W tiles.
        tm, tn, tk = 256, 512, 1024
    else:
        # v5e / v6e (128 MiB VMEM): ~8 MiB double-buffered bf16 W tiles.
        tm, tn, tk = 256, 1024, 2048
    return min(tm, m_pad), min(tn, n_pad), min(tk, k_pad)


def lora_linear(x, W, bias, A, B):
    """y = x @ W.T + bias + (x @ A.T) @ B.T  (PyTorch LoRALinear.forward).

    x: (M, K), W: (N, K), bias: (N,), A: (r, K), B: (N, r)  ->  (M, N)
    """
    M, K = x.shape
    N = W.shape[0]
    r = A.shape[0]

    # LoRA first matmul hoisted out of the kernel: (M, r) is tiny, and doing
    # it inside the grid would re-stream A and recompute x@A.T per N tile.
    xa = jnp.dot(x.astype(jnp.float32), A.astype(jnp.float32).T,
                 precision=lax.Precision.HIGHEST)            # (M, r) f32

    m8 = _round_up(M, 8)
    n128 = _round_up(N, 128)
    k128 = _round_up(K, 128)
    r_p = _round_up(r, 8)            # sublane multiple only, NOT 128

    tm, tn, tk = _pick_tiles(m8, n128, k128)
    m_pad = _round_up(m8, tm)
    n_pad = _round_up(n128, tn)
    k_pad = _round_up(k128, tk)

    # bf16 for the DMA + MXU streams, f32 accumulation in the kernel.
    xp = _pad2(x, m_pad, k_pad).astype(jnp.bfloat16)
    Wp = _pad2(W, n_pad, k_pad).astype(jnp.bfloat16)
    bp = _pad2(bias.reshape(1, N).astype(jnp.float32), 1, n_pad)
    xap = _pad2(xa, m_pad, r_p)                               # f32, tiny
    Bp = _pad2(B.astype(jnp.float32), n_pad, r_p)             # f32, tiny

    grid = (m_pad // tm, n_pad // tn, k_pad // tk)
    gm, gn, _ = grid

    # Advisory cost from the padded work / DMA traffic actually executed.
    nbytes = lambda a: a.size * a.dtype.itemsize
    flops = 2 * m_pad * n_pad * k_pad + 2 * m_pad * n_pad * r_p
    bytes_accessed = int(gn * nbytes(xp) + gm * nbytes(Wp) + gm * nbytes(bp)
                         + gn * nbytes(xap) + gm * nbytes(Bp)
                         + m_pad * n_pad * jnp.dtype(x.dtype).itemsize)

    out = pl.pallas_call(
        _lora_linear_kernel,
        out_shape=jax.ShapeDtypeStruct((m_pad, n_pad), x.dtype),
        grid_spec=pltpu.PrefetchScalarGridSpec(
            num_scalar_prefetch=0,
            grid=grid,
            in_specs=[
                pl.BlockSpec((tm, tk), lambda i, j, k: (i, k)),     # x
                pl.BlockSpec((tn, tk), lambda i, j, k: (j, k)),     # W
                pl.BlockSpec((1, tn), lambda i, j, k: (0, j)),      # bias
                pl.BlockSpec((tm, r_p), lambda i, j, k: (i, 0)),    # x @ A.T
                pl.BlockSpec((tn, r_p), lambda i, j, k: (j, 0)),    # B
            ],
            out_specs=pl.BlockSpec((tm, tn), lambda i, j, k: (i, j)),
            scratch_shapes=[pltpu.VMEM((tm, tn), jnp.float32)],
        ),
        compiler_params=pltpu.CompilerParams(
            dimension_semantics=("parallel", "parallel", "arbitrary"),
        ),
        cost_estimate=pl.CostEstimate(
            flops=flops, transcendentals=0, bytes_accessed=bytes_accessed),
    )(xp, Wp, bp, xap, Bp)

    return out[:M, :N]


# --------------------- tiny regression head (N == 1) -----------------------

def _head_kernel(x_ref, w_ref, b_ref, o_ref):
    dn = (((1,), (1,)), ((), ()))
    o_ref[...] = (lax.dot_general(x_ref[...], w_ref[...], dn,
                                  preferred_element_type=jnp.float32)
                  + b_ref[...]).astype(o_ref.dtype)


def linear_head(x, W, bias):
    """Plain y = x @ W.T + bias for the tiny regressor (out_features = 1).

    Single-block kernel, everything resident in VMEM: routing an N=1 output
    through the tiled LoRA path would pad N 1->128 / r 1->8+ and launch a full
    pipeline for ~128x wasted DMA and compute.
    """
    M, K = x.shape
    N = W.shape[0]
    m_pad = _round_up(M, 8)
    k_pad = _round_up(K, 128)
    n_pad = _round_up(N, 8)

    xp = _pad2(x.astype(jnp.float32), m_pad, k_pad)
    Wp = _pad2(W.astype(jnp.float32), n_pad, k_pad)
    bp = _pad2(bias.reshape(1, N).astype(jnp.float32), 1, n_pad)

    out = pl.pallas_call(
        _head_kernel,
        out_shape=jax.ShapeDtypeStruct((m_pad, n_pad), jnp.float32),
    )(xp, Wp, bp)
    return out[:M, :N].astype(x.dtype)


if __name__ == "__main__":
    # MolFormerRegressor.forward:
    #   pooled = molformer(input_ids, mask).last_hidden_state[:, 0]
    #   logits = Linear(hidden, 1)(pooled)
    # TODO(synk): the pretrained MolFormer transformer backbone (embeddings +
    # attention stack) is an external HF model and is not re-implemented here;
    # a synthetic last_hidden_state stands in for its output.  The Pallas
    # kernels cover the LoRA-adapted linear layers of the fine-tuned backbone
    # and the regression head; CLS pooling is a plain slice.
    batch, seq, hidden, r = 16, 8, 256, 16

    key = jax.random.PRNGKey(0)
    kh, kw, kb, ka, kB, kwr, kbr = jax.random.split(key, 7)

    # Synthetic backbone output; CLS pooling.
    last_hidden_state = jax.random.normal(kh, (batch, seq, hidden), jnp.float32)
    pooled = last_hidden_state[:, 0]                         # (batch, hidden)

    scale = 1.0 / jnp.sqrt(hidden)
    # LoRA-adapted hidden->hidden projection (as inside the tuned MolFormer).
    W = jax.random.normal(kw, (hidden, hidden), jnp.float32) * scale
    b = jax.random.normal(kb, (hidden,), jnp.float32) * scale
    A = jax.random.normal(ka, (r, hidden), jnp.float32) * 0.02
    Bm = jax.random.normal(kB, (hidden, r), jnp.float32) * 0.02
    # Regression head Linear(hidden, 1).
    W_reg = jax.random.normal(kwr, (1, hidden), jnp.float32) * scale
    b_reg = jax.random.normal(kbr, (1,), jnp.float32) * scale

    feat = lora_linear(pooled, W, b, A, Bm)                  # (batch, hidden)
    logits = linear_head(feat, W_reg, b_reg)                 # (batch, 1)
    logits = jax.block_until_ready(logits)

    assert feat.shape == (batch, hidden)
    assert logits.shape == (batch, 1)

    # --- references -----------------------------------------------------
    hi = lax.Precision.HIGHEST
    lora_term = jnp.dot(jnp.dot(pooled, A.T, precision=hi), Bm.T, precision=hi)

    # Tight check against a reference using the same bf16-quantized x / W the
    # kernel streams (f32 accumulation in both).
    xq = pooled.astype(jnp.bfloat16).astype(jnp.float32)
    Wq = W.astype(jnp.bfloat16).astype(jnp.float32)
    feat_ref_q = jnp.dot(xq, Wq.T, precision=hi) + b + lora_term
    err_q = float(jnp.max(jnp.abs(feat - feat_ref_q)))
    assert jnp.allclose(feat, feat_ref_q, atol=2e-3, rtol=2e-3), err_q

    # Loose check against the pure-f32 module math (bf16 weight/activation
    # quantization is the only approximation).
    feat_ref_f = jnp.dot(pooled, W.T, precision=hi) + b + lora_term
    err_f = float(jnp.max(jnp.abs(feat - feat_ref_f)))
    assert jnp.allclose(feat, feat_ref_f, atol=5e-2, rtol=5e-2), err_f

    # Head kernel check (all f32) and end-to-end module check.
    logits_ref_head = jnp.dot(feat, W_reg.T, precision=hi) + b_reg
    err_h = float(jnp.max(jnp.abs(logits - logits_ref_head)))
    assert jnp.allclose(logits, logits_ref_head, atol=2e-3, rtol=2e-3), err_h

    logits_ref_f = jnp.dot(feat_ref_f, W_reg.T, precision=hi) + b_reg
    err_e2e = float(jnp.max(jnp.abs(logits - logits_ref_f)))
    assert jnp.allclose(logits, logits_ref_f, atol=5e-2, rtol=5e-2), err_e2e

    print("KERNEL_OK")
</pallas_src>

<mosaic_0001>
module attributes {stable_mosaic.version = 11 : i64} {
  func.func @_lora_linear_kernel(%arg0: i32, %arg1: i32, %arg2: i32, %arg3: memref<16x256xbf16, #tpu.memory_space<vmem>>, %arg4: memref<256x256xbf16, #tpu.memory_space<vmem>>, %arg5: memref<1x256xf32, #tpu.memory_space<vmem>>, %arg6: memref<16x16xf32, #tpu.memory_space<vmem>>, %arg7: memref<256x16xf32, #tpu.memory_space<vmem>>, %arg8: memref<16x256xf32, #tpu.memory_space<vmem>>, %arg9: memref<16x256xf32, #tpu.memory_space<vmem>>) attributes {dimension_semantics = [#tpu.dimension_semantics<parallel>, #tpu.dimension_semantics<parallel>, #tpu.dimension_semantics<arbitrary>], iteration_bounds = array<i64: 1, 1, 1>, scalar_prefetch = 0 : i64, scratch_operands = 1 : i64, tpu.core_type = #tpu.core_type<tc>, window_params = [{transform_indices = @transform_0, window_bounds = array<i64: 16, 256>}, {transform_indices = @transform_1, window_bounds = array<i64: 256, 256>}, {transform_indices = @transform_2, window_bounds = array<i64: 1, 256>}, {transform_indices = @transform_3, window_bounds = array<i64: 16, 16>}, {transform_indices = @transform_4, window_bounds = array<i64: 256, 16>}, {transform_indices = @transform_5, window_bounds = array<i64: 16, 256>}]} {
    %c0_i32 = arith.constant 0 : i32
    %0 = arith.cmpi eq, %arg2, %c0_i32 : i32
    %1 = arith.extui %0 : i1 to i32
    %c0_i32_0 = arith.constant 0 : i32
    %2 = arith.cmpi ne, %1, %c0_i32_0 : i32
    scf.if %2 {
      %cst_10 = arith.constant 0.000000e+00 : f32
      %12 = vector.broadcast %cst_10 : f32 to vector<16x256xf32>
      %c0_11 = arith.constant 0 : index
      %c0_12 = arith.constant 0 : index
      %13 = vector.load %arg9[%c0_11, %c0_12] : memref<16x256xf32, #tpu.memory_space<vmem>>, vector<16x256xf32>
      tpu.vector_store %arg9[%c0_11, %c0_12], %12 {strides = array<i32>} : memref<16x256xf32, #tpu.memory_space<vmem>>, vector<16x256xf32>,
    } else {
    }
    %c0 = arith.constant 0 : index
    %c0_1 = arith.constant 0 : index
    %3 = vector.load %arg9[%c0, %c0_1] : memref<16x256xf32, #tpu.memory_space<vmem>>, vector<16x256xf32>
    %c0_2 = arith.constant 0 : index
    %c0_3 = arith.constant 0 : index
    %4 = vector.load %arg3[%c0_2, %c0_3] : memref<16x256xbf16, #tpu.memory_space<vmem>>, vector<16x256xbf16>
    %c0_4 = arith.constant 0 : index
    %c0_5 = arith.constant 0 : index
    %5 = vector.load %arg4[%c0_4, %c0_5] : memref<256x256xbf16, #tpu.memory_space<vmem>>, vector<256x256xbf16>
    %cst = arith.constant dense<0.000000e+00> : vector<16x256xf32>
    %6 = tpu.matmul %4, %5, %cst {dimension_numbers = #tpu.dot_dimension_numbers<[1], [1], [0], [0], [0, 0, 1, 0], [], []>} : vector<16x256xbf16>, vector<256x256xbf16>, vector<16x256xf32> -> vector<16x256xf32>
    %7 = arith.addf %3, %6 : vector<16x256xf32>
    %c0_6 = arith.constant 0 : index
    %c0_7 = arith.constant 0 : index
    %8 = vector.load %arg9[%c0_6, %c0_7] : memref<16x256xf32, #tpu.memory_space<vmem>>, vector<16x256xf32>
    tpu.vector_store %arg9[%c0_6, %c0_7], %7 {strides = array<i32>} : memref<16x256xf32, #tpu.memory_space<vmem>>, vector<16x256xf32>,
    %c0_i32_8 = arith.constant 0 : i32
    %9 = arith.cmpi eq, %arg2, %c0_i32_8 : i32
    %10 = arith.extui %9 : i1 to i32
    %c0_i32_9 = arith.constant 0 : i32
    %11 = arith.cmpi ne, %10, %c0_i32_9 : i32
    scf.if %11 {
      %c0_10 = arith.constant 0 : index
      %c0_11 = arith.constant 0 : index
      %12 = vector.load %arg6[%c0_10, %c0_11] : memref<16x16xf32, #tpu.memory_space<vmem>>, vector<16x16xf32>
      %c0_12 = arith.constant 0 : index
      %c0_13 = arith.constant 0 : index
      %13 = vector.load %arg7[%c0_12, %c0_13] : memref<256x16xf32, #tpu.memory_space<vmem>>, vector<256x16xf32>
      %cst_14 = arith.constant dense<0.000000e+00> : vector<16x256xf32>
      %14 = tpu.matmul %12, %13, %cst_14 {dimension_numbers = #tpu.dot_dimension_numbers<[1], [1], [0], [0], [0, 0, 1, 0], [], []>} : vector<16x16xf32>, vector<256x16xf32>, vector<16x256xf32> -> vector<16x256xf32>
      %c0_15 = arith.constant 0 : index
      %c0_16 = arith.constant 0 : index
      %15 = vector.load %arg9[%c0_15, %c0_16] : memref<16x256xf32, #tpu.memory_space<vmem>>, vector<16x256xf32>
      %16 = arith.addf %15, %14 : vector<16x256xf32>
      %c0_17 = arith.constant 0 : index
      %c0_18 = arith.constant 0 : index
      %17 = vector.load %arg5[%c0_17, %c0_18] : memref<1x256xf32, #tpu.memory_space<vmem>>, vector<1x256xf32>
      %18 = vector.broadcast %17 : vector<1x256xf32> to vector<16x256xf32>
      %19 = arith.addf %16, %18 : vector<16x256xf32>
      %c0_19 = arith.constant 0 : index
      %c0_20 = arith.constant 0 : index
      %20 = vector.load %arg8[%c0_19, %c0_20] : memref<16x256xf32, #tpu.memory_space<vmem>>, vector<16x256xf32>
      tpu.vector_store %arg8[%c0_19, %c0_20], %19 {strides = array<i32>} : memref<16x256xf32, #tpu.memory_space<vmem>>, vector<16x256xf32>,
    } else {
    }
    return
  }
  func.func @transform_0(%arg0: i32, %arg1: i32, %arg2: i32) -> (i32, i32) {
    %c0_i32 = arith.constant 0 : i32
    return %arg0, %arg2 : i32, i32
  }
  func.func @transform_1(%arg0: i32, %arg1: i32, %arg2: i32) -> (i32, i32) {
    %c0_i32 = arith.constant 0 : i32
    return %arg1, %arg2 : i32, i32
  }
  func.func @transform_2(%arg0: i32, %arg1: i32, %arg2: i32) -> (i32, i32) {
    %c0_i32 = arith.constant 0 : i32
    %c0_i32_0 = arith.constant 0 : i32
    return %c0_i32, %arg1 : i32, i32
  }
  func.func @transform_3(%arg0: i32, %arg1: i32, %arg2: i32) -> (i32, i32) {
    %c0_i32 = arith.constant 0 : i32
    %c0_i32_0 = arith.constant 0 : i32
    return %arg0, %c0_i32 : i32, i32
  }
  func.func @transform_4(%arg0: i32, %arg1: i32, %arg2: i32) -> (i32, i32) {
    %c0_i32 = arith.constant 0 : i32
    %c0_i32_0 = arith.constant 0 : i32
    return %arg1, %c0_i32 : i32, i32
  }
  func.func @transform_5(%arg0: i32, %arg1: i32, %arg2: i32) -> (i32, i32) {
    %c0_i32 = arith.constant 0 : i32
    return %arg0, %arg1 : i32, i32
  }
}

</mosaic_0001>

<bundles_post_ra>
// kernel: tpu_custom_call.1
= control target key start
LH: loop header
LB: loop body
LE: loop exit
PB: predicated region body
PF: predicated region fallthrough
CT: control target
= control target key end

     0   :  { %10 = vsyncpa [#allocation4], 0  ;;  %s1250_s0 = inlined_call_operand.vmem [shape: bf16[16,256], index: 0, kind: input, shape index: {}]   ;;  %s1251_s1 = inlined_call_operand.vmem [shape: bf16[256,256], index: 1, kind: input, shape index: {}]   ;;  %s1252_s2 = inlined_call_operand.hbm [shape: f32[1,256], index: 2, kind: input, shape index: {}]   ;;  %s1253_s3 = inlined_call_operand.vmem [shape: f32[16,16], index: 3, kind: input, shape index: {}]   ;;  %s1254_s4 = inlined_call_operand.vmem [shape: f32[256,16], index: 4, kind: input, shape index: {}]   ;;  %s1255_s5 = inlined_call_operand.hbm [shape: f32[16,256], index: 5, kind: output, shape index: {}]  }
   0x1   :  { %11 = vsyncpa [#allocation5], 0  ;;  %s21_s20 = sshll.u32 %s1252_s2, 4  ;;  %s836_s21 = smov [#allocation3]   ;;  %s22_s20 = int_to_ptr.hbm [resolvable:$true] %s21_s20 }
   0x2   :  { %s23_s22 = sshll.u32 %s836_s21, 4  ;;  %s24_s22 = int_to_ptr.vmem [resolvable:$true] %s23_s22 }
   0x3   :  { %26 = dma.hbm_to_vmem [thread:$0]  %s22_s20, 32, %s24_s22, [#allocation4]  }
   0x4   :  { %832 = dma.done.wait [#allocation4], 32  }
   0x5   :  { %833 = vsyncadd [#allocation4], 4294967264  ;;  %v608_v0 = vld [vmem:[%s1251_s1 + $0x70] sm:$0xf]  ;;  %v731_v1 = vld [vmem:[%s1251_s1 + $0x74] sm:$0xf0] }
   0x6   :  { %v730_v2 = vld [vmem:[%s1251_s1 + $0x74] sm:$0xf]  ;;  %v609_v3 = vor.u32 %v731_v1, %v608_v0  ;;  %v610_v4 = vld [vmem:[%s1251_s1 + $0x78] sm:$0xf0]  ;;  %v672_v5 = vld [vmem:[%s1251_s1 + $0xf0] sm:$0xf] }
   0x7   :  { %v747_v6 = vld [vmem:[%s1251_s1 + $0xf4] sm:$0xf0]  ;;  %v613_v7 = vor.u32 %v730_v2, %v610_v4  ;;  %v746_v9 = vld [vmem:[%s1251_s1 + $0xf4] sm:$0xf]  ;;  %v674_v10 = vld [vmem:[%s1251_s1 + $0xf8] sm:$0xf0] }
   0x8   :  { %v673_v8 = vor.u32 %v747_v6, %v672_v5  ;;  %251 = vmatpush.bf16.xpose.msra.mxu0 %v609_v3  ;;  %v677_v11 = vor.u32 %v746_v9, %v674_v10  ;;  %v600_v12 = vld [vmem:[%s1251_s1 + $0x60] sm:$0xf]  ;;  %v729_v13 = vld [vmem:[%s1251_s1 + $0x64] sm:$0xf0]  ;;  %v728_v14 = vld [vmem:[%s1251_s1 + $0x64] sm:$0xf] }
   0x9   :  { %265 = vmatpush.bf16.xpose.msra.mxu1 %v613_v7  ;;  %v602_v15 = vld [vmem:[%s1251_s1 + $0x68] sm:$0xf0]  ;;  %v664_v16 = vld [vmem:[%s1251_s1 + $0xe0] sm:$0xf]  ;;  %v745_v17 = vld [vmem:[%s1251_s1 + $0xe4] sm:$0xf0]  ;;  %v601_v20 = vor.u32 %v729_v13, %v600_v12 }
   0xa   :  { %279 = vmatpush.bf16.xpose.msra.mxu2 %v673_v8  ;;  %293 = vmatpush.bf16.xpose.msra.mxu3 %v677_v11  ;;  %v744_v18 = vld [vmem:[%s1251_s1 + $0xe4] sm:$0xf]  ;;  %v666_v19 = vld [vmem:[%s1251_s1 + $0xe8] sm:$0xf0]  ;;  %v605_v21 = vor.u32 %v728_v14, %v602_v15  ;;  %v665_v22 = vor.u32 %v745_v17, %v664_v16  ;;  %v592_v24 = vld [vmem:[%s1251_s1 + $0x50] sm:$0xf] }
   0xb   :  { %v669_v23 = vor.u32 %v744_v18, %v666_v19  ;;  %v727_v25 = vld [vmem:[%s1251_s1 + $0x54] sm:$0xf0]  ;;  %v726_v26 = vld [vmem:[%s1251_s1 + $0x54] sm:$0xf]  ;;  %v594_v27 = vld [vmem:[%s1251_s1 + $0x58] sm:$0xf0] }
   0xc   :  { %v656_v28 = vld [vmem:[%s1251_s1 + $0xd0] sm:$0xf]  ;;  %v743_v29 = vld [vmem:[%s1251_s1 + $0xd4] sm:$0xf0]  ;;  %v742_v30 = vld [vmem:[%s1251_s1 + $0xd4] sm:$0xf]  ;;  %v593_v32 = vor.u32 %v727_v25, %v592_v24  ;;  %v597_v33 = vor.u32 %v726_v26, %v594_v27 }
   0xd   :  { %v658_v31 = vld [vmem:[%s1251_s1 + $0xd8] sm:$0xf0]  ;;  %v657_v34 = vor.u32 %v743_v29, %v656_v28  ;;  %v584_v36 = vld [vmem:[%s1251_s1 + $0x40] sm:$0xf]  ;;  %v725_v37 = vld [vmem:[%s1251_s1 + $0x44] sm:$0xf0] }
   0xe   :  { %v661_v35 = vor.u32 %v742_v30, %v658_v31  ;;  %v724_v38 = vld [vmem:[%s1251_s1 + $0x44] sm:$0xf]  ;;  %v586_v39 = vld [vmem:[%s1251_s1 + $0x48] sm:$0xf0]  ;;  %v648_v40 = vld [vmem:[%s1251_s1 + $0xc0] sm:$0xf]  ;;  %v585_v44 = vor.u32 %v725_v37, %v584_v36 }
   0xf   :  { %v741_v41 = vld [vmem:[%s1251_s1 + $0xc4] sm:$0xf0]  ;;  %v740_v42 = vld [vmem:[%s1251_s1 + $0xc4] sm:$0xf]  ;;  %v650_v43 = vld [vmem:[%s1251_s1 + $0xc8] sm:$0xf0]  ;;  %v589_v45 = vor.u32 %v724_v38, %v586_v39 }
  0x10   :  { %252 = vmatpush.bf16.xpose.msra.mxu0 %v601_v20  ;;  %v649_v46 = vor.u32 %v741_v41, %v648_v40  ;;  %v653_v47 = vor.u32 %v740_v42, %v650_v43  ;;  %v576_v48 = vld [vmem:[%s1251_s1 + $0x30] sm:$0xf]  ;;  %v723_v49 = vld [vmem:[%s1251_s1 + $0x34] sm:$0xf0]  ;;  %v722_v50 = vld [vmem:[%s1251_s1 + $0x34] sm:$0xf] }
  0x11   :  { %266 = vmatpush.bf16.xpose.msra.mxu1 %v605_v21  ;;  %v578_v51 = vld [vmem:[%s1251_s1 + $0x38] sm:$0xf0]  ;;  %v640_v52 = vld [vmem:[%s1251_s1 + $0xb0] sm:$0xf]  ;;  %v739_v53 = vld [vmem:[%s1251_s1 + $0xb4] sm:$0xf0]  ;;  %v577_v56 = vor.u32 %v723_v49, %v576_v48 }
  0x12   :  { %280 = vmatpush.bf16.xpose.msra.mxu2 %v665_v22  ;;  %294 = vmatpush.bf16.xpose.msra.mxu3 %v669_v23  ;;  %v738_v54 = vld [vmem:[%s1251_s1 + $0xb4] sm:$0xf]  ;;  %v642_v55 = vld [vmem:[%s1251_s1 + $0xb8] sm:$0xf0]  ;;  %v581_v57 = vor.u32 %v722_v50, %v578_v51  ;;  %v641_v58 = vor.u32 %v739_v53, %v640_v52  ;;  %v568_v60 = vld [vmem:[%s1251_s1 + $0x20] sm:$0xf] }
  0x13   :  { %v645_v59 = vor.u32 %v738_v54, %v642_v55  ;;  %v721_v61 = vld [vmem:[%s1251_s1 + $0x24] sm:$0xf0]  ;;  %v720_v62 = vld [vmem:[%s1251_s1 + $0x24] sm:$0xf]  ;;  %v570_v63 = vld [vmem:[%s1251_s1 + $0x28] sm:$0xf0] }
  0x14   :  { %v632_v0 = vld [vmem:[%s1251_s1 + $0xa0] sm:$0xf]  ;;  %v737_v1 = vld [vmem:[%s1251_s1 + $0xa4] sm:$0xf0]  ;;  %v736_v2 = vld [vmem:[%s1251_s1 + $0xa4] sm:$0xf]  ;;  %v569_v4 = vor.u32 %v721_v61, %v568_v60  ;;  %v573_v5 = vor.u32 %v720_v62, %v570_v63 }
  0x15   :  { %v634_v3 = vld [vmem:[%s1251_s1 + $0xa8] sm:$0xf0]  ;;  %v633_v6 = vor.u32 %v737_v1, %v632_v0  ;;  %v560_v8 = vld [vmem:[%s1251_s1 + $0x10] sm:$0xf]  ;;  %v719_v9 = vld [vmem:[%s1251_s1 + $0x14] sm:$0xf0] }
  0x16   :  { %v637_v7 = vor.u32 %v736_v2, %v634_v3  ;;  %v718_v10 = vld [vmem:[%s1251_s1 + $0x14] sm:$0xf]  ;;  %v562_v11 = vld [vmem:[%s1251_s1 + $0x18] sm:$0xf0]  ;;  %v624_v12 = vld [vmem:[%s1251_s1 + $0x90] sm:$0xf]  ;;  %v561_v16 = vor.u32 %v719_v9, %v560_v8 }
  0x17   :  { %v735_v13 = vld [vmem:[%s1251_s1 + $0x94] sm:$0xf0]  ;;  %v734_v14 = vld [vmem:[%s1251_s1 + $0x94] sm:$0xf]  ;;  %v626_v15 = vld [vmem:[%s1251_s1 + $0x98] sm:$0xf0]  ;;  %v565_v17 = vor.u32 %v718_v10, %v562_v11 }
  0x18   :  { %253 = vmatpush.bf16.xpose.msra.mxu0 %v593_v32  ;;  %v625_v18 = vor.u32 %v735_v13, %v624_v12  ;;  %v629_v19 = vor.u32 %v734_v14, %v626_v15  ;;  %v552_v20 = vld [vmem:[%s1251_s1] sm:$0xf]  ;;  %v717_v21 = vld [vmem:[%s1251_s1 + $0x4] sm:$0xf0]  ;;  %v716_v22 = vld [vmem:[%s1251_s1 + $0x4] sm:$0xf] }
  0x19   :  { %267 = vmatpush.bf16.xpose.msra.mxu1 %v597_v33  ;;  %v554_v23 = vld [vmem:[%s1251_s1 + $0x8] sm:$0xf0]  ;;  %v616_v24 = vld [vmem:[%s1251_s1 + $0x80] sm:$0xf]  ;;  %v733_v25 = vld [vmem:[%s1251_s1 + $0x84] sm:$0xf0]  ;;  %v553_v28 = vor.u32 %v717_v21, %v552_v20 }
  0x1a   :  { %281 = vmatpush.bf16.xpose.msra.mxu2 %v657_v34  ;;  %295 = vmatpush.bf16.xpose.msra.mxu3 %v661_v35  ;;  %v732_v26 = vld [vmem:[%s1251_s1 + $0x84] sm:$0xf]  ;;  %v618_v27 = vld [vmem:[%s1251_s1 + $0x88] sm:$0xf0]  ;;  %v557_v29 = vor.u32 %v716_v22, %v554_v23  ;;  %v617_v30 = vor.u32 %v733_v25, %v616_v24  ;;  %v335_v32 = vld [vmem:[%s1254_s4 + $0x78] sm:$0xff]  ;;  %vm352_vm0 = vcmask 130048  }
  0x1b   :  { %v621_v31 = vor.u32 %v732_v26, %v618_v27  ;;  %v351_v33 = vld [vmem:[%s1254_s4 + $0xf8] sm:$0xff]  ;;  %v334_v34 = vld [vmem:[%s1254_s4 + $0x70] sm:$0xff]  ;;  %v333_v36 = vld [vmem:[%s1254_s4 + $0x68] sm:$0xff]  ;;  %s529_s16 = sshll.u32 %s1255_s5, 4  ;;  %s838_s17 = smov 256   ;;  %s530_s16 = int_to_ptr.hbm [resolvable:$true] %s529_s16 }
  0x1c   :  { %v350_v35 = vld [vmem:[%s1254_s4 + $0xf0] sm:$0xff]  ;;  %v349_v37 = vld [vmem:[%s1254_s4 + $0xe8] sm:$0xff]  ;;  %v544_v38 = vld [vmem:[%s1250_s0] sm:$0xf] }
  0x1d   :  { %v715_v39 = vld [vmem:[%s1250_s0 + $0x4] sm:$0xf0]  ;;  %v714_v40 = vld [vmem:[%s1250_s0 + $0x4] sm:$0xf]  ;;  %v546_v42 = vld [vmem:[%s1250_s0 + $0x8] sm:$0xf0] }
  0x1e   :  { %v545_v41 = vor.u32 %v715_v39, %v544_v38  ;;  %v549_v43 = vor.u32 %v714_v40, %v546_v42  ;;  %v330_v48 = vld [vmem:[%s1254_s4 + $0x50] sm:$0xff]  ;;  %v329_v50 = vld [vmem:[%s1254_s4 + $0x48] sm:$0xff]  ;;  %v328_v52 = vld [vmem:[%s1254_s4 + $0x40] sm:$0xff]  ;;  %s839_s0 = smov 16  }
  0x1f   :  { %v346_v49 = vld [vmem:[%s1254_s4 + $0xd0] sm:$0xff]  ;;  %v345_v51 = vld [vmem:[%s1254_s4 + $0xc8] sm:$0xff]  ;;  %v344_v53 = vld [vmem:[%s1254_s4 + $0xc0] sm:$0xff] }
  0x20   :  { %254 = vmatpush.bf16.xpose.msra.mxu0 %v585_v44  ;;  %v332_v44 = vld [vmem:[%s1254_s4 + $0x60] sm:$0xff]  ;;  %v327_v54 = vld [vmem:[%s1254_s4 + $0x38] sm:$0xff]  ;;  %v322_v0 = vld [vmem:[%s1254_s4 + $0x10] sm:$0xff] }
  0x21   :  { %268 = vmatpush.bf16.xpose.msra.mxu1 %v589_v45  ;;  %v348_v45 = vld [vmem:[%s1254_s4 + $0xe0] sm:$0xff]  ;;  %v343_v55 = vld [vmem:[%s1254_s4 + $0xb8] sm:$0xff]  ;;  %v338_v1 = vld [vmem:[%s1254_s4 + $0x90] sm:$0xff] }
  0x22   :  { %282 = vmatpush.bf16.xpose.msra.mxu2 %v649_v46  ;;  %296 = vmatpush.bf16.xpose.msra.mxu3 %v653_v47  ;;  %v331_v46 = vld [vmem:[%s1254_s4 + $0x58] sm:$0xff]  ;;  %v324_v60 = vld [vmem:[%s1254_s4 + $0x20] sm:$0xff]  ;;  %v321_v2 = vld [vmem:[%s1254_s4 + $0x8] sm:$0xff] }
  0x23   :  { %v347_v47 = vld [vmem:[%s1254_s4 + $0xd8] sm:$0xff]  ;;  %v340_v61 = vld [vmem:[%s1254_s4 + $0xa0] sm:$0xff]  ;;  %v337_v3 = vld [vmem:[%s1254_s4 + $0x88] sm:$0xff] }
  0x24   :  { %v323_v62 = vld [vmem:[%s1254_s4 + $0x18] sm:$0xff]  ;;  %v509_v14 = vld [vmem:[#allocation3] sm:$0x3] }
  0x25   :  { %v339_v63 = vld [vmem:[%s1254_s4 + $0x98] sm:$0xff]  ;;  %v512_v21 = vperm.slane %v509_v14, 1 }
  0x28   :  { %255 = vmatpush.bf16.xpose.msra.mxu0 %v577_v56  ;;  %v326_v56 = vld [vmem:[%s1254_s4 + $0x30] sm:$0xff] }
  0x29   :  { %269 = vmatpush.bf16.xpose.msra.mxu1 %v581_v57  ;;  %v342_v57 = vld [vmem:[%s1254_s4 + $0xb0] sm:$0xff] }
  0x2a   :  { %283 = vmatpush.bf16.xpose.msra.mxu2 %v641_v58  ;;  %297 = vmatpush.bf16.xpose.msra.mxu3 %v645_v59  ;;  %v325_v58 = vld [vmem:[%s1254_s4 + $0x28] sm:$0xff] }
  0x2b   :  { %v341_v59 = vld [vmem:[%s1254_s4 + $0xa8] sm:$0xff] }
  0x30   :  { %256 = vmatpush.bf16.xpose.msra.mxu0 %v569_v4  ;;  %v320_v4 = vld [vmem:[%s1254_s4] sm:$0xff] }
  0x31   :  { %270 = vmatpush.bf16.xpose.msra.mxu1 %v573_v5  ;;  %v336_v5 = vld [vmem:[%s1254_s4 + $0x80] sm:$0xff] }
  0x32   :  { %284 = vmatpush.bf16.xpose.msra.mxu2 %v633_v6  ;;  %298 = vmatpush.bf16.xpose.msra.mxu3 %v637_v7  ;;  %v318_v6 = vld [vmem:[%s1253_s3] sm:$0xff]  ;;  %v319_v7 = vld [vmem:[%s1253_s3 + $0x8] sm:$0xff]  ;;  %s837_s3 = smov [#allocation6]  }
  0x33   :  { %s527_s4 = sshll.u32 %s837_s3, 4  ;;  %s528_s4 = int_to_ptr.vmem [resolvable:$true] %s527_s4 }
  0x38   :  { %257 = vmatpush.bf16.xpose.msra.mxu0 %v561_v16 }
  0x39   :  { %271 = vmatpush.bf16.xpose.msra.mxu1 %v565_v17  ;;  %v511_v17 = vperm.slane %v509_v14, 0 }
  0x3a   :  { %285 = vmatpush.bf16.xpose.msra.mxu2 %v625_v18  ;;  %299 = vmatpush.bf16.xpose.msra.mxu3 %v629_v19 }
  0x40   :  { %258 = vmatpush.bf16.xpose.msra.mxu0 %v553_v28 }
  0x41   :  { %272 = vmatpush.bf16.xpose.msra.mxu1 %v557_v29 }
  0x42   :  { %286 = vmatpush.bf16.xpose.msra.mxu2 %v617_v30  ;;  %300 = vmatpush.bf16.xpose.msra.mxu3 %v621_v31 }
  0x47   :  { %259 = vmatmul.bf16.vlgmr.msra.gmra.mxu0 %v545_v41 }
  0x48   :  { %678 = vmatpush.xpose.msk.msrb.mxu0 %vm352_vm0, %v335_v32  ;;  %273 = vmatmul.bf16.vlgmr.msra.gmra.mxu1 %v549_v43 }
  0x49   :  { %696 = vmatpush.xpose.msk.msrb.mxu1 %vm352_vm0, %v351_v33  ;;  %287 = vmatmul.bf16.vlgmr.msra.gmra.mxu2 %v545_v41 }
  0x4a   :  { %748 = vmatpush.xpose.msk.msrb.mxu2 %vm352_vm0, %v335_v32  ;;  %764 = vmatpush.xpose.msk.msrb.mxu3 %vm352_vm0, %v351_v33 }
  0x4b   :  { %301 = vmatmul.bf16.vlgmr.msra.gmra.mxu3 %v549_v43 }
  0x4c   :  { %679 = vmatpush.xpose.msk.msrb.mxu0 %vm352_vm0, %v334_v34 }
  0x4d   :  { %697 = vmatpush.xpose.msk.msrb.mxu1 %vm352_vm0, %v350_v35 }
  0x4e   :  { %749 = vmatpush.xpose.msk.msrb.mxu2 %vm352_vm0, %v334_v34  ;;  %765 = vmatpush.xpose.msk.msrb.mxu3 %vm352_vm0, %v350_v35 }
  0x50   :  { %680 = vmatpush.xpose.msk.msrb.mxu0 %vm352_vm0, %v333_v36 }
  0x51   :  { %698 = vmatpush.xpose.msk.msrb.mxu1 %vm352_vm0, %v349_v37 }
  0x52   :  { %750 = vmatpush.xpose.msk.msrb.mxu2 %vm352_vm0, %v333_v36  ;;  %766 = vmatpush.xpose.msk.msrb.mxu3 %vm352_vm0, %v349_v37 }
  0x54   :  { %681 = vmatpush.xpose.msk.msrb.mxu0 %vm352_vm0, %v332_v44 }
  0x55   :  { %699 = vmatpush.xpose.msk.msrb.mxu1 %vm352_vm0, %v348_v45 }
  0x56   :  { %751 = vmatpush.xpose.msk.msrb.mxu2 %vm352_vm0, %v332_v44  ;;  %767 = vmatpush.xpose.msk.msrb.mxu3 %vm352_vm0, %v348_v45 }
  0x58   :  { %682 = vmatpush.xpose.msk.msrb.mxu0 %vm352_vm0, %v331_v46 }
  0x59   :  { %700 = vmatpush.xpose.msk.msrb.mxu1 %vm352_vm0, %v347_v47 }
  0x5a   :  { %752 = vmatpush.xpose.msk.msrb.mxu2 %vm352_vm0, %v331_v46  ;;  %768 = vmatpush.xpose.msk.msrb.mxu3 %vm352_vm0, %v347_v47 }
  0x5c   :  { %683 = vmatpush.xpose.msk.msrb.mxu0 %vm352_vm0, %v330_v48 }
  0x5d   :  { %701 = vmatpush.xpose.msk.msrb.mxu1 %vm352_vm0, %v346_v49 }
  0x5e   :  { %753 = vmatpush.xpose.msk.msrb.mxu2 %vm352_vm0, %v330_v48  ;;  %769 = vmatpush.xpose.msk.msrb.mxu3 %vm352_vm0, %v346_v49 }
  0x60   :  { %684 = vmatpush.xpose.msk.msrb.mxu0 %vm352_vm0, %v329_v50 }
  0x61   :  { %702 = vmatpush.xpose.msk.msrb.mxu1 %vm352_vm0, %v345_v51 }
  0x62   :  { %754 = vmatpush.xpose.msk.msrb.mxu2 %vm352_vm0, %v329_v50  ;;  %770 = vmatpush.xpose.msk.msrb.mxu3 %vm352_vm0, %v345_v51 }
  0x64   :  { %685 = vmatpush.xpose.msk.msrb.mxu0 %vm352_vm0, %v328_v52 }
  0x65   :  { %703 = vmatpush.xpose.msk.msrb.mxu1 %vm352_vm0, %v344_v53 }
  0x66   :  { %755 = vmatpush.xpose.msk.msrb.mxu2 %vm352_vm0, %v328_v52  ;;  %771 = vmatpush.xpose.msk.msrb.mxu3 %vm352_vm0, %v344_v53 }
  0x68   :  { %686 = vmatpush.xpose.msk.msrb.mxu0 %vm352_vm0, %v327_v54 }
  0x69   :  { %704 = vmatpush.xpose.msk.msrb.mxu1 %vm352_vm0, %v343_v55 }
  0x6a   :  { %756 = vmatpush.xpose.msk.msrb.mxu2 %vm352_vm0, %v327_v54  ;;  %772 = vmatpush.xpose.msk.msrb.mxu3 %vm352_vm0, %v343_v55 }
  0x6c   :  { %687 = vmatpush.xpose.msk.msrb.mxu0 %vm352_vm0, %v326_v56 }
  0x6d   :  { %705 = vmatpush.xpose.msk.msrb.mxu1 %vm352_vm0, %v342_v57 }
  0x6e   :  { %757 = vmatpush.xpose.msk.msrb.mxu2 %vm352_vm0, %v326_v56  ;;  %773 = vmatpush.xpose.msk.msrb.mxu3 %vm352_vm0, %v342_v57 }
  0x70   :  { %688 = vmatpush.xpose.msk.msrb.mxu0 %vm352_vm0, %v325_v58 }
  0x71   :  { %706 = vmatpush.xpose.msk.msrb.mxu1 %vm352_vm0, %v341_v59 }
  0x72   :  { %758 = vmatpush.xpose.msk.msrb.mxu2 %vm352_vm0, %v325_v58  ;;  %774 = vmatpush.xpose.msk.msrb.mxu3 %vm352_vm0, %v341_v59 }
  0x74   :  { %689 = vmatpush.xpose.msk.msrb.mxu0 %vm352_vm0, %v324_v60 }
  0x75   :  { %707 = vmatpush.xpose.msk.msrb.mxu1 %vm352_vm0, %v340_v61 }
  0x76   :  { %759 = vmatpush.xpose.msk.msrb.mxu2 %vm352_vm0, %v324_v60  ;;  %775 = vmatpush.xpose.msk.msrb.mxu3 %vm352_vm0, %v340_v61 }
  0x78   :  { %690 = vmatpush.xpose.msk.msrb.mxu0 %vm352_vm0, %v323_v62 }
  0x79   :  { %708 = vmatpush.xpose.msk.msrb.mxu1 %vm352_vm0, %v339_v63 }
  0x7a   :  { %760 = vmatpush.xpose.msk.msrb.mxu2 %vm352_vm0, %v323_v62  ;;  %776 = vmatpush.xpose.msk.msrb.mxu3 %vm352_vm0, %v339_v63 }
  0x7c   :  { %691 = vmatpush.xpose.msk.msrb.mxu0 %vm352_vm0, %v322_v0 }
  0x7d   :  { %709 = vmatpush.xpose.msk.msrb.mxu1 %vm352_vm0, %v338_v1 }
  0x7e   :  { %761 = vmatpush.xpose.msk.msrb.mxu2 %vm352_vm0, %v322_v0  ;;  %777 = vmatpush.xpose.msk.msrb.mxu3 %vm352_vm0, %v338_v1 }
  0x80   :  { %692 = vmatpush.xpose.msk.msrb.mxu0 %vm352_vm0, %v321_v2 }
  0x81   :  { %710 = vmatpush.xpose.msk.msrb.mxu1 %vm352_vm0, %v337_v3 }
  0x82   :  { %762 = vmatpush.xpose.msk.msrb.mxu2 %vm352_vm0, %v321_v2  ;;  %778 = vmatpush.xpose.msk.msrb.mxu3 %vm352_vm0, %v337_v3 }
  0x84   :  { %693 = vmatpush.xpose.msk.msrb.mxu0 %vm352_vm0, %v320_v4 }
  0x85   :  { %711 = vmatpush.xpose.msk.msrb.mxu1 %vm352_vm0, %v336_v5 }
  0x86   :  { %763 = vmatpush.xpose.msk.msrb.mxu2 %vm352_vm0, %v320_v4  ;;  %779 = vmatpush.xpose.msk.msrb.mxu3 %vm352_vm0, %v336_v5 }
  0x87   :  { %694 = vmatmul.msk.f32.vlgmr.msrb.gmra.mxu0 %vm352_vm0, %v318_v6 }
  0x88   :  { %712 = vmatmul.msk.f32.vlgmr.msrb.gmra.mxu1 %vm352_vm0, %v318_v6 }
  0x89   :  { %695 = vmatmul.msk.f32.vlgmr.msrb.gmra.mxu2 %vm352_vm0, %v319_v7  ;;  %713 = vmatmul.msk.f32.vlgmr.msrb.gmra.mxu3 %vm352_vm0, %v319_v7 }
  0xc4   :  { %v260_v8 = vpop.f32.mrf.mxu0 }
  0xc5   :  { %v274_v9 = vpop.f32.mrf.mxu1 }
  0xc6   :  { %v275_v15 = vadd.f32 %v274_v9, %v260_v8 }
  0xcc   :  { %v288_v10 = vpop.f32.mrf.mxu2  ;;  %v262_v12 = vpop.f32.mrf.mxu0 }
  0xcd   :  { %v276_v13 = vpop.f32.mrf.mxu1 }
  0xce   :  { %v302_v11 = vpop.f32.mrf.mxu3  ;;  %v277_v27 = vadd.f32 %v276_v13, %v262_v12 }
  0xcf   :  { %v303_v18 = vadd.f32 %v302_v11, %v288_v10 }
  0xd4   :  { %v290_v16 = vpop.f32.mrf.mxu2 }
  0xd6   :  { %v304_v19 = vpop.f32.mrf.mxu3 }
  0xd7   :  { %v305_v28 = vadd.f32 %v304_v19, %v290_v16 }
 0x104   :  { %v472_v20 = vpop.f32.mrf.mxu0 }
 0x105   :  { %v505_v22 = vadd.f32 %v472_v20, %v275_v15  ;;  %v495_v23 = vpop.f32.mrf.mxu1 }
 0x106   :  { %v506_v24 = vadd.f32 %v495_v23, %v303_v18 }
 0x107   :  { %v515_v25 = vadd.f32 %v511_v17, %v505_v22 }
 0x108   :  { %v516_v26 = vadd.f32 %v512_v21, %v506_v24 }
 0x109   :  { %519 = vst [vmem:[#allocation6] sm:$0xff] %v515_v25 }
 0x10a   :  { %520 = vst [vmem:[#allocation6 + $0x8] sm:$0xff] %v516_v26 }
 0x10c   :  { %v475_v29 = vpop.f32.mrf.mxu2  ;;  %v498_v31 = vpop.f32.mrf.mxu3 }
 0x10d   :  { %v507_v30 = vadd.f32 %v475_v29, %v277_v27  ;;  %v508_v32 = vadd.f32 %v498_v31, %v305_v28 }
 0x10f   :  { %v517_v33 = vadd.f32 %v511_v17, %v507_v30  ;;  %v518_v34 = vadd.f32 %v512_v21, %v508_v32 }
 0x111   :  { %521 = vst [vmem:[#allocation6 + $0x10] sm:$0xff] %v517_v33 }
 0x112   :  { %522 = vst [vmem:[#allocation6 + $0x18] sm:$0xff] %v518_v34 }
 0x113   :  { %535 = dma.vmem_to_hbm [thread:$0]  %s528_s4, 512, %s530_s16, [#allocation5], %s838_s17, %s838_s17, %s839_s0  }
 0x114   :  { %834 = dma.done.wait [#allocation5], 512  }
 0x115   :  { %835 = vsyncadd [#allocation5], 4294966784 }
 0x116   :  { %540 = vsyncpa [#allocation4], 1 }
 0x117   :  { %541 = vsyncpa [#allocation5], 1 }

</bundles_post_ra>
